<compile_context>
chip_gen: v6e
topology: v6e:2x2x1
jax: 0.10.0
libtpu: 0.0.40
codegen_flags: <defaults>
</compile_context>

<pallas_src>
import functools

import jax
import jax.numpy as jnp
import numpy as np
from jax.experimental import pallas as pl
from jax.experimental.pallas import tpu as pltpu

NUM_SUBSET = 3
BN_EPS = 1e-5
_VMEM_LIMIT = 32 * 1024 * 1024  # safe on v5e/v6e/v7x; raise for bigger production tiles


def _agc_stats_kernel(x_ref, wb_ref, w_ref, stats_ref):
    """Pass 1: accumulate per-channel sum / sum-of-squares of hidden and res.

    x_ref    : (Cp, Pt)        padded channels x lane-dense tv tile
    wb_ref   : (3, Pt)         per-position graph weights (period V over tv)
    w_ref    : (2*O, 4*Cp)     [[g0 g1 g2 0], [0 0 0 r_w]]
    stats_ref: (O, 4)          accumulator, cols = [sum_h, sumsq_h, sum_r, sumsq_r]
    """
    O = stats_ref.shape[0]

    @pl.when(pl.program_id(1) == 0)
    def _init():
        stats_ref[...] = jnp.zeros_like(stats_ref)

    xw = x_ref[...]                                        # (Cp, Pt) compute dtype
    rhs = jnp.concatenate(
        [xw * wb_ref[0:1, :], xw * wb_ref[1:2, :], xw * wb_ref[2:3, :], xw],
        axis=0)                                            # (4*Cp, Pt), tile-aligned
    zz = jnp.dot(w_ref[...], rhs, preferred_element_type=jnp.float32)  # (2O, Pt) f32
    hidden = zz[:O]
    res = zz[O:]
    # TODO(synk): for very large N*T*V use a mean-shifted / Welford accumulation.
    stats_ref[:, 0:1] += jnp.sum(hidden, axis=1, keepdims=True)
    stats_ref[:, 1:2] += jnp.sum(hidden * hidden, axis=1, keepdims=True)
    stats_ref[:, 2:3] += jnp.sum(res, axis=1, keepdims=True)
    stats_ref[:, 3:4] += jnp.sum(res * res, axis=1, keepdims=True)


def _agc_apply_kernel(x_ref, wb_ref, w_ref, shift_ref, o_ref):
    """Pass 2: one deep-K matmul with BN scales folded into the weights.

    w_ref    : (O, 4*Cp)  [s_h*g0 | s_h*g1 | s_h*g2 | s_r*r_w]
    shift_ref: (O, 1)     bn_b + rbn_b - s_h*mean_h - s_r*mean_r
    o_ref    : (O, Pt)
    """
    xw = x_ref[...]
    rhs = jnp.concatenate(
        [xw * wb_ref[0:1, :], xw * wb_ref[1:2, :], xw * wb_ref[2:3, :], xw],
        axis=0)
    y = jnp.dot(w_ref[...], rhs, preferred_element_type=jnp.float32)   # (O, Pt) f32
    o_ref[...] = jnp.maximum(y + shift_ref[...], 0.0).astype(o_ref.dtype)


def _auto_p_tile(tv):
    """Largest multiple of 128 that divides TV, under a generation-aware lane budget."""
    target = 2048                      # v5e/v6e budget (raise vmem_limit for bigger)
    try:
        info = pltpu.get_tpu_info()
        if getattr(info, "vmem_capacity_bytes", 128 << 20) <= (64 << 20):
            target = 1024              # v7x: 64 MiB physical VMEM -> halve the tile
    except Exception:
        pass
    best = None
    t = 128
    while t <= min(tv, target):
        if tv % t == 0:
            best = t
        t += 128
    # TODO(synk): ragged TV (e.g. V=25, T=300) needs a masked tail tile; fall back to full TV.
    return best if best is not None else tv


def adaptive_graph_conv_mod(x_nctv, A, graph_attn, a_w, a_b, b_w, b_b, g_w, g_b,
                            bn_g, bn_b, r_w, r_b, rbn_g, rbn_b,
                            *, compute_dtype=jnp.float32, p_tile=None):
    """Wrapper: parameter folding + tiled two-pass pallas_call pipeline.

    x_nctv is PyTorch-style (N, C, T, V); returns (N, O, T, V).
    Implements the in_channels != out_channels branch (conv+BN residual).
    """
    del a_w, a_b, b_w, b_b   # dead: the final einsum sums the softmax axis (sum == 1)
    del g_b, r_b             # dead: per-channel biases cancel inside the BatchNorms

    N, C, T, V = x_nctv.shape
    O = g_w.shape[1]
    TV = T * V

    if p_tile is None:
        p_tile = _auto_p_tile(TV)
    if TV % p_tile != 0:
        raise ValueError(f"p_tile={p_tile} must divide T*V={TV}")
    J = TV // p_tile
    grid = (N, J)

    # ---- layout: NCTV -> (N, C, T*V). Free reshape (channel already major per sample);
    #      no HBM transpose round trips.  Pad C so the in-kernel 4-block concat is
    #      tile-aligned for both f32 (8) and bf16 (16) sublane packing.
    Cp = ((C + 15) // 16) * 16
    x_f = x_nctv.reshape(N, C, TV)
    if Cp != C:
        x_f = jnp.pad(x_f, ((0, 0), (0, Cp - C), (0, 0)))
    x_f = x_f.astype(compute_dtype)

    # ---- per-vertex graph weights: 1 + sum_w (A + graph_attn)[i][v, w]; independent of n,
    #      period V along tv -> only a (3, TV) table ever touches HBM.
    wrow = 1.0 + jnp.sum((A + graph_attn).astype(jnp.float32), axis=-1)   # (3, V)
    wb = jnp.tile(wrow, (1, T)).astype(compute_dtype)                      # (3, TV)

    def pad_k(w):  # (O, C) -> (O, Cp)
        return jnp.pad(w.astype(jnp.float32), ((0, 0), (0, Cp - C)))

    g0, g1, g2, rw = pad_k(g_w[0]), pad_k(g_w[1]), pad_k(g_w[2]), pad_k(r_w)
    zeros = jnp.zeros((O, Cp), jnp.float32)

    # Pass-1 weight: top O rows -> hidden, bottom O rows -> residual.
    w_stats = jnp.concatenate(
        [jnp.concatenate([g0, g1, g2, zeros], axis=1),
         jnp.concatenate([zeros, zeros, zeros, rw], axis=1)],
        axis=0).astype(compute_dtype)                                      # (2O, 4Cp)

    x_spec = pl.BlockSpec((None, Cp, p_tile), lambda n, j: (n, 0, j))
    wb_spec = pl.BlockSpec((3, p_tile), lambda n, j: (0, j))

    # ---- pass 1: per-channel batch statistics (accumulate over the tv-tile axis).
    stats = pl.pallas_call(
        _agc_stats_kernel,
        out_shape=jax.ShapeDtypeStruct((N, O, 4), jnp.float32),
        grid=grid,
        in_specs=[x_spec, wb_spec,
                  pl.BlockSpec((2 * O, 4 * Cp), lambda n, j: (0, 0))],
        out_specs=pl.BlockSpec((None, O, 4), lambda n, j: (n, 0, 0)),
        compiler_params=pltpu.CompilerParams(
            dimension_semantics=("parallel", "arbitrary"),
            vmem_limit_bytes=_VMEM_LIMIT),
    )(x_f, wb, w_stats)

    # ---- fold the two training-mode BatchNorms into per-channel scale/shift (O-length math).
    totals = jnp.sum(stats, axis=0)                       # (O, 4)
    cnt = jnp.float32(N * TV)
    mean_h = totals[:, 0] / cnt
    var_h = jnp.maximum(totals[:, 1] / cnt - mean_h * mean_h, 0.0)
    mean_r = totals[:, 2] / cnt
    var_r = jnp.maximum(totals[:, 3] / cnt - mean_r * mean_r, 0.0)
    s_h = bn_g.astype(jnp.float32) * jax.lax.rsqrt(var_h + BN_EPS)
    s_r = rbn_g.astype(jnp.float32) * jax.lax.rsqrt(var_r + BN_EPS)
    shift = (bn_b + rbn_b).astype(jnp.float32) - s_h * mean_h - s_r * mean_r

    # Pass-2 weight with BN scales folded in: out = relu(W_apply @ rhs + shift).
    w_apply = jnp.concatenate(
        [g0 * s_h[:, None], g1 * s_h[:, None], g2 * s_h[:, None], rw * s_r[:, None]],
        axis=1).astype(compute_dtype)                     # (O, 4Cp)

    out = pl.pallas_call(
        _agc_apply_kernel,
        out_shape=jax.ShapeDtypeStruct((N, O, TV), jnp.float32),
        grid=grid,
        in_specs=[x_spec, wb_spec,
                  pl.BlockSpec((O, 4 * Cp), lambda n, j: (0, 0)),
                  pl.BlockSpec((O, 1), lambda n, j: (0, 0))],
        out_specs=pl.BlockSpec((None, O, p_tile), lambda n, j: (n, 0, j)),
        compiler_params=pltpu.CompilerParams(
            dimension_semantics=("parallel", "parallel"),
            vmem_limit_bytes=_VMEM_LIMIT),
    )(x_f, wb, w_apply, shift[:, None])

    return out.reshape(N, O, T, V)       # free reshape; output stays channel-major


def reference_nctv(x, A, graph_attn, a_w, a_b, b_w, b_b, g_w, g_b,
                   bn_g, bn_b, r_w, r_b, rbn_g, rbn_b):
    """Pure-JAX mirror of the full PyTorch forward (incl. softmax path) for validation."""
    A_comb = A + graph_attn
    IC = a_w.shape[1]
    hidden = None
    for i in range(NUM_SUBSET):
        a_out = jnp.einsum('oc,nctv->notv', a_w[i], x) + a_b[i][None, :, None, None]
        b_out = jnp.einsum('oc,nctv->notv', b_w[i], x) + b_b[i][None, :, None, None]
        A1 = jnp.transpose(a_out, (0, 3, 1, 2))                     # n v c t
        S = jnp.einsum('nvct,nctw->nvwt', A1, b_out) / IC
        S = jax.nn.softmax(S, axis=-2)
        S = S + A_comb[i][None, :, :, None]
        y = jnp.einsum('nctv,nvwt->nctv', x, S)
        z = jnp.einsum('oc,nctv->notv', g_w[i], y) + g_b[i][None, :, None, None]
        hidden = z if hidden is None else hidden + z
    mean = hidden.mean(axis=(0, 2, 3), keepdims=True)
    var = hidden.var(axis=(0, 2, 3), keepdims=True)
    hbn = bn_g[None, :, None, None] * (hidden - mean) / jnp.sqrt(var + BN_EPS) \
        + bn_b[None, :, None, None]
    res = jnp.einsum('oc,nctv->notv', r_w, x) + r_b[None, :, None, None]
    rmean = res.mean(axis=(0, 2, 3), keepdims=True)
    rvar = res.var(axis=(0, 2, 3), keepdims=True)
    rbn = rbn_g[None, :, None, None] * (res - rmean) / jnp.sqrt(rvar + BN_EPS) \
        + rbn_b[None, :, None, None]
    return jax.nn.relu(hbn + rbn)


if __name__ == "__main__":
    # Small shapes consistent with the module: x is (N, C_in, T, V).
    N, C_in, C_out, T, V = 2, 4, 8, 16, 16
    coff_embedding = 4
    IC = C_out // coff_embedding                    # inter_c = 2

    key = jax.random.PRNGKey(0)
    ks = jax.random.split(key, 16)

    A = jax.random.uniform(ks[0], (NUM_SUBSET, V, V), jnp.float32)
    graph_attn = jnp.ones((NUM_SUBSET, V, V), jnp.float32)               # init constant 1
    a_w = 0.1 * jax.random.normal(ks[1], (NUM_SUBSET, IC, C_in), jnp.float32)
    a_b = 0.05 * jax.random.normal(ks[2], (NUM_SUBSET, IC), jnp.float32)
    b_w = 0.1 * jax.random.normal(ks[3], (NUM_SUBSET, IC, C_in), jnp.float32)
    b_b = 0.05 * jax.random.normal(ks[4], (NUM_SUBSET, IC), jnp.float32)
    g_w = 0.1 * jax.random.normal(ks[5], (NUM_SUBSET, C_out, C_in), jnp.float32)
    g_b = 0.05 * jax.random.normal(ks[6], (NUM_SUBSET, C_out), jnp.float32)
    bn_g = 1.0 + 0.1 * jax.random.normal(ks[7], (C_out,), jnp.float32)
    bn_b = 0.05 * jax.random.normal(ks[8], (C_out,), jnp.float32)
    r_w = 0.1 * jax.random.normal(ks[9], (C_out, C_in), jnp.float32)
    r_b = 0.05 * jax.random.normal(ks[10], (C_out,), jnp.float32)
    rbn_g = 1.0 + 0.1 * jax.random.normal(ks[11], (C_out,), jnp.float32)
    rbn_b = 0.05 * jax.random.normal(ks[12], (C_out,), jnp.float32)

    x = jax.random.normal(ks[13], (N, C_in, T, V), jnp.float32)

    params = (A, graph_attn, a_w, a_b, b_w, b_b, g_w, g_b,
              bn_g, bn_b, r_w, r_b, rbn_g, rbn_b)

    ref = reference_nctv(x, *params)

    # f32 path, explicit small tile so the multi-tile stats accumulation is exercised.
    fn_f32 = jax.jit(functools.partial(adaptive_graph_conv_mod, p_tile=128))
    out = jax.block_until_ready(fn_f32(x, *params))
    np.testing.assert_allclose(np.asarray(out), np.asarray(ref), rtol=1e-4, atol=1e-4)

    # bf16 matmul inputs (f32 accumulation/epilogue), auto tile size.
    fn_bf16 = jax.jit(functools.partial(adaptive_graph_conv_mod,
                                        compute_dtype=jnp.bfloat16))
    out_bf = jax.block_until_ready(fn_bf16(x, *params))
    np.testing.assert_allclose(np.asarray(out_bf), np.asarray(ref), rtol=5e-2, atol=5e-2)

    print("KERNEL_OK")
</pallas_src>

<mosaic_0001>
module attributes {stable_mosaic.version = 11 : i64} {
  func.func @_agc_apply_kernel(%arg0: i32, %arg1: i32, %arg2: memref<1x16x128xf32, #tpu.memory_space<vmem>>, %arg3: memref<3x128xf32, #tpu.memory_space<vmem>>, %arg4: memref<8x64xf32, #tpu.memory_space<vmem>>, %arg5: memref<8x1xf32, #tpu.memory_space<vmem>>, %arg6: memref<1x8x128xf32, #tpu.memory_space<vmem>>) attributes {dimension_semantics = [#tpu.dimension_semantics<parallel>, #tpu.dimension_semantics<parallel>], iteration_bounds = array<i64: 2, 2>, scalar_prefetch = 0 : i64, scratch_operands = 0 : i64, tpu.core_type = #tpu.core_type<tc>, window_params = [{transform_indices = @transform_0, window_bounds = array<i64: 1, 16, 128>}, {transform_indices = @transform_1, window_bounds = array<i64: 3, 128>}, {pipeline_mode = #tpu.pipeline_mode<synchronous>, transform_indices = @transform_2, window_bounds = array<i64: 8, 64>}, {pipeline_mode = #tpu.pipeline_mode<synchronous>, transform_indices = @transform_3, window_bounds = array<i64: 8, 1>}, {transform_indices = @transform_4, window_bounds = array<i64: 1, 8, 128>}]} {
    %c0 = arith.constant 0 : index
    %c0_0 = arith.constant 0 : index
    %c0_1 = arith.constant 0 : index
    %0 = vector.load %arg2[%c0, %c0_0, %c0_1] : memref<1x16x128xf32, #tpu.memory_space<vmem>>, vector<1x16x128xf32>
    %1 = vector.shape_cast %0 : vector<1x16x128xf32> to vector<16x128xf32>
    %c0_2 = arith.constant 0 : index
    %c0_3 = arith.constant 0 : index
    %2 = vector.load %arg3[%c0_2, %c0_3] : memref<3x128xf32, #tpu.memory_space<vmem>>, vector<1x128xf32>
    %3 = vector.broadcast %2 : vector<1x128xf32> to vector<16x128xf32>
    %4 = arith.mulf %1, %3 : vector<16x128xf32>
    %c1 = arith.constant 1 : index
    %c0_4 = arith.constant 0 : index
    %5 = vector.load %arg3[%c1, %c0_4] : memref<3x128xf32, #tpu.memory_space<vmem>>, vector<1x128xf32>
    %6 = vector.broadcast %5 : vector<1x128xf32> to vector<16x128xf32>
    %7 = arith.mulf %1, %6 : vector<16x128xf32>
    %c2 = arith.constant 2 : index
    %c0_5 = arith.constant 0 : index
    %8 = vector.load %arg3[%c2, %c0_5] : memref<3x128xf32, #tpu.memory_space<vmem>>, vector<1x128xf32>
    %9 = vector.broadcast %8 : vector<1x128xf32> to vector<16x128xf32>
    %10 = arith.mulf %1, %9 : vector<16x128xf32>
    %11 = tpu.concatenate %4, %7, %10, %1 in 0 : vector<16x128xf32>, vector<16x128xf32>, vector<16x128xf32>, vector<16x128xf32> -> vector<64x128xf32>
    %c0_6 = arith.constant 0 : index
    %c0_7 = arith.constant 0 : index
    %12 = vector.load %arg4[%c0_6, %c0_7] : memref<8x64xf32, #tpu.memory_space<vmem>>, vector<8x64xf32>
    %cst = arith.constant dense<0.000000e+00> : vector<8x128xf32>
    %13 = tpu.matmul %12, %11, %cst {dimension_numbers = #tpu.dot_dimension_numbers<[1], [0], [0], [1], [0, 0, 1, 1], [], []>} : vector<8x64xf32>, vector<64x128xf32>, vector<8x128xf32> -> vector<8x128xf32>
    %c0_8 = arith.constant 0 : index
    %c0_9 = arith.constant 0 : index
    %14 = vector.load %arg5[%c0_8, %c0_9] : memref<8x1xf32, #tpu.memory_space<vmem>>, vector<8x1xf32>
    %15 = vector.broadcast %14 : vector<8x1xf32> to vector<8x128xf32>
    %16 = arith.addf %13, %15 : vector<8x128xf32>
    %cst_10 = arith.constant 0.000000e+00 : f32
    %17 = vector.broadcast %cst_10 : f32 to vector<8x128xf32>
    %18 = arith.maximumf %16, %17 : vector<8x128xf32>
    %c0_11 = arith.constant 0 : index
    %c0_12 = arith.constant 0 : index
    %c0_13 = arith.constant 0 : index
    %19 = vector.load %arg6[%c0_11, %c0_12, %c0_13] : memref<1x8x128xf32, #tpu.memory_space<vmem>>, vector<1x8x128xf32>
    %20 = vector.shape_cast %19 : vector<1x8x128xf32> to vector<8x128xf32>
    %21 = vector.shape_cast %18 : vector<8x128xf32> to vector<1x8x128xf32>
    tpu.vector_store %arg6[%c0_11, %c0_12, %c0_13], %21 {strides = array<i32>} : memref<1x8x128xf32, #tpu.memory_space<vmem>>, vector<1x8x128xf32>,
    return
  }
  func.func @transform_0(%arg0: i32, %arg1: i32) -> (i32, i32, i32) {
    %c0_i32 = arith.constant 0 : i32
    %c0_i32_0 = arith.constant 0 : i32
    return %arg0, %c0_i32, %arg1 : i32, i32, i32
  }
  func.func @transform_1(%arg0: i32, %arg1: i32) -> (i32, i32) {
    %c0_i32 = arith.constant 0 : i32
    %c0_i32_0 = arith.constant 0 : i32
    return %c0_i32, %arg1 : i32, i32
  }
  func.func @transform_2(%arg0: i32, %arg1: i32) -> (i32, i32) {
    %c0_i32 = arith.constant 0 : i32
    %c0_i32_0 = arith.constant 0 : i32
    %c0_i32_1 = arith.constant 0 : i32
    return %c0_i32, %c0_i32_0 : i32, i32
  }
  func.func @transform_3(%arg0: i32, %arg1: i32) -> (i32, i32) {
    %c0_i32 = arith.constant 0 : i32
    %c0_i32_0 = arith.constant 0 : i32
    %c0_i32_1 = arith.constant 0 : i32
    return %c0_i32, %c0_i32_0 : i32, i32
  }
  func.func @transform_4(%arg0: i32, %arg1: i32) -> (i32, i32, i32) {
    %c0_i32 = arith.constant 0 : i32
    %c0_i32_0 = arith.constant 0 : i32
    return %arg0, %c0_i32, %arg1 : i32, i32, i32
  }
}

module attributes {stable_mosaic.version = 11 : i64} {
  func.func @_agc_stats_kernel(%arg0: i32, %arg1: i32, %arg2: memref<1x16x128xf32, #tpu.memory_space<vmem>>, %arg3: memref<3x128xf32, #tpu.memory_space<vmem>>, %arg4: memref<16x64xf32, #tpu.memory_space<vmem>>, %arg5: memref<1x8x4xf32, #tpu.memory_space<vmem>>) attributes {dimension_semantics = [#tpu.dimension_semantics<parallel>, #tpu.dimension_semantics<arbitrary>], iteration_bounds = array<i64: 2, 2>, scalar_prefetch = 0 : i64, scratch_operands = 0 : i64, tpu.core_type = #tpu.core_type<tc>, window_params = [{transform_indices = @transform_0, window_bounds = array<i64: 1, 16, 128>}, {transform_indices = @transform_1, window_bounds = array<i64: 3, 128>}, {pipeline_mode = #tpu.pipeline_mode<synchronous>, transform_indices = @transform_2, window_bounds = array<i64: 16, 64>}, {transform_indices = @transform_3, window_bounds = array<i64: 1, 8, 4>}]} {
    %c0_i32 = arith.constant 0 : i32
    %0 = arith.cmpi eq, %arg1, %c0_i32 : i32
    %1 = arith.extui %0 : i1 to i32
    %c0_i32_0 = arith.constant 0 : i32
    %2 = arith.cmpi ne, %1, %c0_i32_0 : i32
    scf.if %2 {
      %cst_36 = arith.constant 0.000000e+00 : f32
      %53 = vector.broadcast %cst_36 : f32 to vector<8x4xf32>
      %c0_37 = arith.constant 0 : index
      %c0_38 = arith.constant 0 : index
      %c0_39 = arith.constant 0 : index
      %54 = vector.load %arg5[%c0_37, %c0_38, %c0_39] : memref<1x8x4xf32, #tpu.memory_space<vmem>>, vector<1x8x4xf32>
      %55 = vector.shape_cast %54 : vector<1x8x4xf32> to vector<8x4xf32>
      %56 = vector.shape_cast %53 : vector<8x4xf32> to vector<1x8x4xf32>
      tpu.vector_store %arg5[%c0_37, %c0_38, %c0_39], %56 {strides = array<i32>} : memref<1x8x4xf32, #tpu.memory_space<vmem>>, vector<1x8x4xf32>,
    } else {
    }
    %c0 = arith.constant 0 : index
    %c0_1 = arith.constant 0 : index
    %c0_2 = arith.constant 0 : index
    %3 = vector.load %arg2[%c0, %c0_1, %c0_2] : memref<1x16x128xf32, #tpu.memory_space<vmem>>, vector<1x16x128xf32>
    %4 = vector.shape_cast %3 : vector<1x16x128xf32> to vector<16x128xf32>
    %c0_3 = arith.constant 0 : index
    %c0_4 = arith.constant 0 : index
    %5 = vector.load %arg3[%c0_3, %c0_4] : memref<3x128xf32, #tpu.memory_space<vmem>>, vector<1x128xf32>
    %6 = vector.broadcast %5 : vector<1x128xf32> to vector<16x128xf32>
    %7 = arith.mulf %4, %6 : vector<16x128xf32>
    %c1 = arith.constant 1 : index
    %c0_5 = arith.constant 0 : index
    %8 = vector.load %arg3[%c1, %c0_5] : memref<3x128xf32, #tpu.memory_space<vmem>>, vector<1x128xf32>
    %9 = vector.broadcast %8 : vector<1x128xf32> to vector<16x128xf32>
    %10 = arith.mulf %4, %9 : vector<16x128xf32>
    %c2 = arith.constant 2 : index
    %c0_6 = arith.constant 0 : index
    %11 = vector.load %arg3[%c2, %c0_6] : memref<3x128xf32, #tpu.memory_space<vmem>>, vector<1x128xf32>
    %12 = vector.broadcast %11 : vector<1x128xf32> to vector<16x128xf32>
    %13 = arith.mulf %4, %12 : vector<16x128xf32>
    %14 = tpu.concatenate %7, %10, %13, %4 in 0 : vector<16x128xf32>, vector<16x128xf32>, vector<16x128xf32>, vector<16x128xf32> -> vector<64x128xf32>
    %c0_7 = arith.constant 0 : index
    %c0_8 = arith.constant 0 : index
    %15 = vector.load %arg4[%c0_7, %c0_8] : memref<16x64xf32, #tpu.memory_space<vmem>>, vector<16x64xf32>
    %cst = arith.constant dense<0.000000e+00> : vector<16x128xf32>
    %16 = tpu.matmul %15, %14, %cst {dimension_numbers = #tpu.dot_dimension_numbers<[1], [0], [0], [1], [0, 0, 1, 1], [], []>} : vector<16x64xf32>, vector<64x128xf32>, vector<16x128xf32> -> vector<16x128xf32>
    %17 = vector.extract_strided_slice %16 {offsets = [0, 0], sizes = [8, 128], strides = [1, 1]} : vector<16x128xf32> to vector<8x128xf32>
    %18 = vector.extract_strided_slice %16 {offsets = [8, 0], sizes = [8, 128], strides = [1, 1]} : vector<16x128xf32> to vector<8x128xf32>
    %c0_9 = arith.constant 0 : index
    %c0_10 = arith.constant 0 : index
    %c0_11 = arith.constant 0 : index
    %19 = vector.load %arg5[%c0_9, %c0_10, %c0_11] : memref<1x8x4xf32, #tpu.memory_space<vmem>>, vector<1x8x1xf32>
    %20 = vector.shape_cast %19 : vector<1x8x1xf32> to vector<8x1xf32>
    %cst_12 = arith.constant dense<0.000000e+00> : vector<8xf32>
    %21 = vector.multi_reduction <add>, %17, %cst_12 [1] : vector<8x128xf32> to vector<8xf32>
    %22 = vector.shape_cast %21 : vector<8xf32> to vector<8x1xf32>
    %23 = arith.addf %20, %22 : vector<8x1xf32>
    %c0_13 = arith.constant 0 : index
    %c0_14 = arith.constant 0 : index
    %c0_15 = arith.constant 0 : index
    %24 = vector.load %arg5[%c0_13, %c0_14, %c0_15] : memref<1x8x4xf32, #tpu.memory_space<vmem>>, vector<1x8x1xf32>
    %25 = vector.shape_cast %24 : vector<1x8x1xf32> to vector<8x1xf32>
    %26 = vector.shape_cast %23 : vector<8x1xf32> to vector<1x8x1xf32>
    tpu.vector_store %arg5[%c0_13, %c0_14, %c0_15], %26 {strides = array<i32>} : memref<1x8x4xf32, #tpu.memory_space<vmem>>, vector<1x8x1xf32>,
    %c0_16 = arith.constant 0 : index
    %c0_17 = arith.constant 0 : index
    %c1_18 = arith.constant 1 : index
    %27 = vector.load %arg5[%c0_16, %c0_17, %c1_18] : memref<1x8x4xf32, #tpu.memory_space<vmem>>, vector<1x8x1xf32>
    %28 = vector.shape_cast %27 : vector<1x8x1xf32> to vector<8x1xf32>
    %29 = arith.mulf %17, %17 : vector<8x128xf32>
    %cst_19 = arith.constant dense<0.000000e+00> : vector<8xf32>
    %30 = vector.multi_reduction <add>, %29, %cst_19 [1] : vector<8x128xf32> to vector<8xf32>
    %31 = vector.shape_cast %30 : vector<8xf32> to vector<8x1xf32>
    %32 = arith.addf %28, %31 : vector<8x1xf32>
    %c0_20 = arith.constant 0 : index
    %c0_21 = arith.constant 0 : index
    %c1_22 = arith.constant 1 : index
    %33 = vector.load %arg5[%c0_20, %c0_21, %c1_22] : memref<1x8x4xf32, #tpu.memory_space<vmem>>, vector<1x8x1xf32>
    %34 = vector.shape_cast %33 : vector<1x8x1xf32> to vector<8x1xf32>
    %35 = vector.shape_cast %32 : vector<8x1xf32> to vector<1x8x1xf32>
    tpu.vector_store %arg5[%c0_20, %c0_21, %c1_22], %35 {strides = array<i32>} : memref<1x8x4xf32, #tpu.memory_space<vmem>>, vector<1x8x1xf32>,
    %c0_23 = arith.constant 0 : index
    %c0_24 = arith.constant 0 : index
    %c2_25 = arith.constant 2 : index
    %36 = vector.load %arg5[%c0_23, %c0_24, %c2_25] : memref<1x8x4xf32, #tpu.memory_space<vmem>>, vector<1x8x1xf32>
    %37 = vector.shape_cast %36 : vector<1x8x1xf32> to vector<8x1xf32>
    %cst_26 = arith.constant dense<0.000000e+00> : vector<8xf32>
    %38 = vector.multi_reduction <add>, %18, %cst_26 [1] : vector<8x128xf32> to vector<8xf32>
    %39 = vector.shape_cast %38 : vector<8xf32> to vector<8x1xf32>
    %40 = arith.addf %37, %39 : vector<8x1xf32>
    %c0_27 = arith.constant 0 : index
    %c0_28 = arith.constant 0 : index
    %c2_29 = arith.constant 2 : index
    %41 = vector.load %arg5[%c0_27, %c0_28, %c2_29] : memref<1x8x4xf32, #tpu.memory_space<vmem>>, vector<1x8x1xf32>
    %42 = vector.shape_cast %41 : vector<1x8x1xf32> to vector<8x1xf32>
    %43 = vector.shape_cast %40 : vector<8x1xf32> to vector<1x8x1xf32>
    tpu.vector_store %arg5[%c0_27, %c0_28, %c2_29], %43 {strides = array<i32>} : memref<1x8x4xf32, #tpu.memory_space<vmem>>, vector<1x8x1xf32>,
    %c0_30 = arith.constant 0 : index
    %c0_31 = arith.constant 0 : index
    %c3 = arith.constant 3 : index
    %44 = vector.load %arg5[%c0_30, %c0_31, %c3] : memref<1x8x4xf32, #tpu.memory_space<vmem>>, vector<1x8x1xf32>
    %45 = vector.shape_cast %44 : vector<1x8x1xf32> to vector<8x1xf32>
    %46 = arith.mulf %18, %18 : vector<8x128xf32>
    %cst_32 = arith.constant dense<0.000000e+00> : vector<8xf32>
    %47 = vector.multi_reduction <add>, %46, %cst_32 [1] : vector<8x128xf32> to vector<8xf32>
    %48 = vector.shape_cast %47 : vector<8xf32> to vector<8x1xf32>
    %49 = arith.addf %45, %48 : vector<8x1xf32>
    %c0_33 = arith.constant 0 : index
    %c0_34 = arith.constant 0 : index
    %c3_35 = arith.constant 3 : index
    %50 = vector.load %arg5[%c0_33, %c0_34, %c3_35] : memref<1x8x4xf32, #tpu.memory_space<vmem>>, vector<1x8x1xf32>
    %51 = vector.shape_cast %50 : vector<1x8x1xf32> to vector<8x1xf32>
    %52 = vector.shape_cast %49 : vector<8x1xf32> to vector<1x8x1xf32>
    tpu.vector_store %arg5[%c0_33, %c0_34, %c3_35], %52 {strides = array<i32>} : memref<1x8x4xf32, #tpu.memory_space<vmem>>, vector<1x8x1xf32>,
    return
  }
  func.func @transform_0(%arg0: i32, %arg1: i32) -> (i32, i32, i32) {
    %c0_i32 = arith.constant 0 : i32
    %c0_i32_0 = arith.constant 0 : i32
    return %arg0, %c0_i32, %arg1 : i32, i32, i32
  }
  func.func @transform_1(%arg0: i32, %arg1: i32) -> (i32, i32) {
    %c0_i32 = arith.constant 0 : i32
    %c0_i32_0 = arith.constant 0 : i32
    return %c0_i32, %arg1 : i32, i32
  }
  func.func @transform_2(%arg0: i32, %arg1: i32) -> (i32, i32) {
    %c0_i32 = arith.constant 0 : i32
    %c0_i32_0 = arith.constant 0 : i32
    %c0_i32_1 = arith.constant 0 : i32
    return %c0_i32, %c0_i32_0 : i32, i32
  }
  func.func @transform_3(%arg0: i32, %arg1: i32) -> (i32, i32, i32) {
    %c0_i32 = arith.constant 0 : i32
    %c0_i32_0 = arith.constant 0 : i32
    %c0_i32_1 = arith.constant 0 : i32
    return %arg0, %c0_i32, %c0_i32_0 : i32, i32, i32
  }
}

</mosaic_0001>

<bundles_post_ra>
// kernel: tile.9
= control target key start
LH: loop header
LB: loop body
LE: loop exit
PB: predicated region body
PF: predicated region fallthrough
CT: control target
= control target key end

     0   :  { %vm5_vm0 = vcmask 1045508   ;;  %s14_s6 = smov 3  ;;  %s17_s7 = smov 12  ;;  %vm19_vm1 = vcmask 1043458   ;;  %vm7_vm2 = vcmask 130048   ;;  %vm28_vm3 = vcmask 1048448   ;;  %s299_s0 = inlined_call_operand.vmem [shape: f32[3,16,16], index: 0, kind: input, shape index: {}]   ;;  %s300_s1 = inlined_call_operand.vmem [shape: f32[3,256], index: 1, kind: output, shape index: {}]  }
   0x1   :  { %v160_v0 = vld [vmem:[%s299_s0 + $0x7] ss:$16 sm:%s14_s6]   ;;  %s22_s12 = smov 48  ;;  %s52_s15 = smov 3  ;;  %vm47_vm4 = vcmask 917248   ;;  %vm66_vm5 = vcmask 786048  }
   0x2   :  { %v161_v1 = vld [vmem:[%s299_s0 + $0x57] ss:$-24 sm:%s17_s7]   ;;  %s55_s16 = smov 12  ;;  %v166_v5 = vld [vmem:[%s299_s0 + $0x5] ss:$16 sm:%s52_s15]   ;;  %s60_s21 = smov 48 }
   0x3   :  { %v20_v2 = vsel %vm19_vm1, %v161_v1, %v160_v0  ;;  %v162_v3 = vld [vmem:[%s299_s0 - $0x21] ss:$16 sm:%s22_s12]   ;;  %v167_v6 = vld [vmem:[%s299_s0 + $0x55] ss:$-24 sm:%s55_s16]   ;;  %s189_s22 = smov 112   ;;  %s33_s25 = smov 3 }
   0x4   :  { %v25_v4 = vsel %vm5_vm0, %v162_v3, %v20_v2  ;;  %v58_v7 = vsel %vm19_vm1, %v167_v6, %v166_v5  ;;  %v168_v8 = vld [vmem:[%s299_s0 - $0x23] ss:$16 sm:%s60_s21]   ;;  %s36_s26 = smov 12  ;;  %v163_v10 = vld [vmem:[%s299_s0 + $0x6] ss:$16 sm:%s33_s25]   ;;  %s41_s2 = smov 48 }
   0x5   :  { %26 = vrot.lane.b32.xlu0 %v25_v4, %s189_s22  ;;  %v63_v9 = vsel %vm5_vm0, %v168_v8, %v58_v7  ;;  %v164_v11 = vld [vmem:[%s299_s0 + $0x56] ss:$-24 sm:%s36_s26]   ;;  %s190_s3 = smov 80   ;;  %s71_s6 = smov 3  ;;  %vm85_vm6 = vcmask 654848   ;;  %vm104_vm7 = vcmask 523648  }
   0x6   :  { %64 = vrot.lane.b32.xlu1 %v63_v9, %s190_s3  ;;  %v39_v12 = vsel %vm19_vm1, %v164_v11, %v163_v10  ;;  %v165_v13 = vld [vmem:[%s299_s0 - $0x22] ss:$16 sm:%s41_s2]   ;;  %s74_s7 = smov 12  ;;  %s79_s12 = smov 48  ;;  %vm123_vm8 = vcmask 392448   ;;  %vm142_vm9 = vcmask 261248  }
   0x7   :  { %v44_v14 = vsel %vm5_vm0, %v165_v13, %v39_v12  ;;  %v169_v15 = vld [vmem:[%s299_s0 + $0x4] ss:$16 sm:%s71_s6]   ;;  %s191_s13 = smov 96   ;;  %v171_v18 = vld [vmem:[%s299_s0 - $0x24] ss:$16 sm:%s79_s12]   ;;  %s90_s16 = smov 3 }
   0x8   :  { %v170_v16 = vld [vmem:[%s299_s0 + $0x54] ss:$-24 sm:%s74_s7]   ;;  %s93_s17 = smov 12  ;;  %v172_v20 = vld [vmem:[%s299_s0 + $0x3] ss:$16 sm:%s90_s16]   ;;  %s98_s22 = smov 48 }
   0x9   :  { %45 = vrot.lane.b32.xlu0 %v44_v14, %s191_s13  ;;  %v77_v17 = vsel %vm19_vm1, %v170_v16, %v169_v15  ;;  %v173_v21 = vld [vmem:[%s299_s0 + $0x53] ss:$-24 sm:%s93_s17]   ;;  %s192_s23 = smov 64   ;;  %s109_s26 = smov 3 }
   0xa   :  { %v82_v19 = vsel %vm5_vm0, %v171_v18, %v77_v17  ;;  %v96_v22 = vsel %vm19_vm1, %v173_v21, %v172_v20  ;;  %v174_v23 = vld [vmem:[%s299_s0 - $0x25] ss:$16 sm:%s98_s22]   ;;  %s112_s27 = smov 12  ;;  %v175_v25 = vld [vmem:[%s299_s0 + $0x2] ss:$16 sm:%s109_s26]   ;;  %s117_s3 = smov 48 }
   0xb   :  { %83 = vrot.lane.b32.xlu1 %v82_v19, %s192_s23  ;;  %v101_v24 = vsel %vm5_vm0, %v174_v23, %v96_v22  ;;  %v176_v26 = vld [vmem:[%s299_s0 + $0x52] ss:$-24 sm:%s112_s27]   ;;  %s193_s4 = smov 48   ;;  %s128_s7 = smov 3 }
   0xc   :  { %v115_v27 = vsel %vm19_vm1, %v176_v26, %v175_v25  ;;  %v177_v28 = vld [vmem:[%s299_s0 - $0x26] ss:$16 sm:%s117_s3]   ;;  %s131_s8 = smov 12  ;;  %v178_v30 = vld [vmem:[%s299_s0 + $0x1] ss:$16 sm:%s128_s7]   ;;  %s136_s13 = smov 48 }
   0xd   :  { %102 = vrot.lane.b32.xlu0 %v101_v24, %s193_s4  ;;  %v120_v29 = vsel %vm5_vm0, %v177_v28, %v115_v27  ;;  %v179_v31 = vld [vmem:[%s299_s0 + $0x51] ss:$-24 sm:%s131_s8]   ;;  %s194_s14 = smov 32   ;;  %v2_v34 = vld [vmem:[%s299_s0] ss:$8 sm:$0xf]  }
   0xe   :  { %v134_v32 = vsel %vm19_vm1, %v179_v31, %v178_v30  ;;  %v180_v33 = vld [vmem:[%s299_s0 - $0x27] ss:$16 sm:%s136_s13]   ;;  %s3_s19 = smov 48 }
   0xf   :  { %121 = vrot.lane.b32.xlu1 %v120_v29, %s194_s14  ;;  %v139_v35 = vsel %vm5_vm0, %v180_v33, %v134_v32  ;;  %v4_v36 = vld [vmem:[%s299_s0] ss:$8 sm:%s3_s19]   ;;  %s195_s0 = smov 16  }
  0x10   :  { %v6_v37 = vsel %vm5_vm0, %v4_v36, %v2_v34 }
  0x11   :  { %140 = vrot.lane.b32.xlu0 %v139_v35, %s195_s0  ;;  %8 = vst.msk [vmem:[#allocation0] ss:$8 sm:$0x3] %vm7_vm2, %v6_v37   ;;  %10 = vst.msk [vmem:[#allocation0 - $0xf] ss:$8 sm:$0xc] %vm7_vm2, %v6_v37  }
  0x12   :  { %12 = vst.msk [vmem:[#allocation0 - $0x1e] ss:$8 sm:$0x30] %vm7_vm2, %v6_v37  }
  0x77   :  { %v27_v38 = vpop.permute.xlu0 %26  }
  0x78   :  { %29 = vst.msk [vmem:[#allocation0] sm:$0x7] %vm28_vm3, %v27_v38   ;;  %31 = vst.msk [vmem:[#allocation0 + $0x5] sm:$0x38] %vm28_vm3, %v27_v38   ;;  %v65_v39 = vpop.permute.xlu1 %64  }
  0x7b   :  { %v46_v40 = vpop.permute.xlu0 %45  }
  0x7c   :  { %48 = vst.msk [vmem:[#allocation0] sm:$0x7] %vm47_vm4, %v46_v40   ;;  %50 = vst.msk [vmem:[#allocation0 + $0x5] sm:$0x38] %vm47_vm4, %v46_v40  }
  0x7d   :  { %67 = vst.msk [vmem:[#allocation0] sm:$0x7] %vm66_vm5, %v65_v39   ;;  %69 = vst.msk [vmem:[#allocation0 + $0x5] sm:$0x38] %vm66_vm5, %v65_v39   ;;  %v84_v41 = vpop.permute.xlu1 %83  }
  0x7e   :  { %86 = vst.msk [vmem:[#allocation0] sm:$0x7] %vm85_vm6, %v84_v41   ;;  %88 = vst.msk [vmem:[#allocation0 + $0x5] sm:$0x38] %vm85_vm6, %v84_v41  }
  0x7f   :  { %v103_v42 = vpop.permute.xlu0 %102  }
  0x80   :  { %105 = vst.msk [vmem:[#allocation0] sm:$0x7] %vm104_vm7, %v103_v42   ;;  %107 = vst.msk [vmem:[#allocation0 + $0x5] sm:$0x38] %vm104_vm7, %v103_v42  }
  0x81   :  { %v122_v43 = vpop.permute.xlu1 %121  }
  0x82   :  { %124 = vst.msk [vmem:[#allocation0] sm:$0x7] %vm123_vm8, %v122_v43   ;;  %126 = vst.msk [vmem:[#allocation0 + $0x5] sm:$0x38] %vm123_vm8, %v122_v43  }
  0x83   :  { %v141_v44 = vpop.permute.xlu0 %140  }
  0x84   :  { %143 = vst.msk [vmem:[#allocation0] sm:$0x7] %vm142_vm9, %v141_v44   ;;  %145 = vst.msk [vmem:[#allocation0 + $0x5] sm:$0x38] %vm142_vm9, %v141_v44  }
  0x8b   :  { %v150_v45 = vld [vmem:[#allocation0] sm:$0xf]  ;;  %v155_v46 = vld [vmem:[#allocation0 + $0x8] sm:$0xf] }
  0x8c   :  { %153 = vst [vmem:[%s300_s1] sm:$0xf] %v150_v45  ;;  %181 = vst [vmem:[%s300_s1 + $0x4] sm:$0xf] %v155_v46 }

// kernel: adaptive_graph_conv_mod.3
= control target key start
LH: loop header
LB: loop body
LE: loop exit
PB: predicated region body
PF: predicated region fallthrough
CT: control target
= control target key end

     0   :  { %s674_s15 = smov 0   ;;  %s676_s16 = smov 0   ;;  %s778_s0 = inlined_call_operand.vmem [shape: f32[2,16,256], index: 0, kind: input, shape index: {}]   ;;  %s779_s1 = inlined_call_operand.vmem [shape: f32[3,256], index: 1, kind: input, shape index: {}]   ;;  %s780_s2 = inlined_call_operand.vmem [shape: f32[8,64], index: 2, kind: input, shape index: {}]   ;;  %s781_s3 = inlined_call_operand.vmem [shape: f32[8,1], index: 3, kind: input, shape index: {}]   ;;  %s782_s4 = inlined_call_operand.vmem [shape: f32[2,8,256], index: 4, kind: output, shape index: {}]  }
   0x1   :  { %s678_s17 = smov 0   ;;  %s680_s18 = smov 0  }
   0x2   :  { %s682_s19 = smov 0   ;;  %s684_s20 = smov 0  }
   0x3   :  { %s686_s21 = smov 0  }
   0x4 LB: > { %s23_s22 = sadd.s32 1, %s636_s19  ;;  %s26_s23 = sadd.s32 1, %s640_s20  ;;  %s644_s21 = sphi %s686_s21, %s14_s21   ;;  %s640_s20 = sphi %s684_s20, %s788_s20   ;;  %s636_s19 = sphi %s682_s19, %s787_s19   ;;  %s632_s18 = sphi %s680_s18, %s786_s18   ;;  %s628_s17 = sphi %s678_s17, %s785_s17   ;;  %s624_s16 = sphi %s676_s16, %s784_s16   ;;  %s620_s15 = sphi %s674_s15, %s783_s15  }
   0x5   : > { %p24_p0 = scmp.ge.s32.totalorder %s23_s22, 2  ;;  %p42_p1 = scmp.ne.s32.totalorder %s624_s16, %s620_s15 }
   0x6   : > { %p43_p2 = scmp.eq.s32.totalorder %s644_s21, 0  ;;  %s35_s27 = sadd.s32 1, %s624_s16 }
   0x7   : > { %s790_s22 = smov (%p24_p0, %s23_s22), 0  ;;  %s792_s23 = smov (!%p24_p0, %s26_s23), %s640_s20 }
   0x8   : > { %p44_p3 = por %p43_p2, %p42_p1  ;;  %p28_p4 = scmp.ge.s32.totalorder %s792_s23, 2 }
   0x9   : > { %s31_s24 = ssub.s32 %s636_s19, %s790_s22  ;;  %p487_p6 = scmp.ge.s32.totalorder %s644_s21, 4 }
   0xa   : > { %s794_s23 = smov (%p28_p4, %s792_s23), 0 }
   0xb   : > { %s30_s25 = ssub.s32 %s640_s20, %s794_s23  ;;  %170 = sbr.rel (%p487_p6) target bundleno = 23 (0x17), region = 24 }
   0xc   : > { %s32_s26 = sor.u32 %s31_s24, %s30_s25 }
   0xd   : > { %p33_p5 = scmp.eq.s32.totalorder %s32_s26, 0 }
   0xf   : > { %s725_s28 = scalar_select %p33_p5, %s624_s16, %s35_s27  }
  0x10   : > { %173 = sbr.rel (!%p44_p3) target bundleno = 23 (0x17), region = 28  ;;  %s175_s29 = sand.u32 (%p44_p3), 1, %s624_s16  }
  0x11   : > { %s489_s30 = sshll.u32 (%p44_p3), %s640_s20, 2  ;;  %s488_s5 = sshll.u32 (%p44_p3), %s175_s29, 4 }
  0x12   : > { %s179_s6 = sadd.s32 (%p44_p3), %s636_s19, %s489_s30  ;;  %s177_s11 = scalar_lea.vmem (%p44_p3), [#allocation2], %s488_s5 }
  0x13   : > { %s490_s7 = sshll.u32 (%p44_p3), %s179_s6, 3 }
  0x14   : > { %s181_s10 = scalar_lea.vmem (%p44_p3), %s778_s0, %s490_s7 }
  0x15   : > { %v212_v0 = vld [vmem:[%s181_s10] sm:$0xff]  ;;  %v214_v1 = vld [vmem:[%s181_s10 + $0x10] sm:$0xff] }
  0x16   : > { %213 = vst [vmem:[%s177_s11] sm:$0xff] %v212_v0  ;;  %215 = vst [vmem:[%s177_s11 + $0x8] sm:$0xff] %v214_v1 }
  0x17 PF: > { %p491_p7 = scmp.ge.s32.totalorder %s644_s21, 1  ;;  %p227_p8 = scmp.lt.s32.totalorder %s644_s21, 5 }
  0x19   : > { %p228_p9 = pnand %p491_p7, %p227_p8 }
  0x1a   : > { %s234_s12 = sand.u32 (!%p228_p9), 1, %s620_s15   ;;  %p266_p10 = scmp.lt.s32.totalorder (!%p228_p9), %s628_s17, 1 }
  0x1b   : > { %231 = sbr.rel (%p228_p9) target bundleno = 247 (0xf7), region = 70  ;;  %s492_s13 = sshll.u32 (!%p228_p9), %s234_s12, 4 }
  0x1c   : > { %s236_s25 = scalar_lea.vmem (!%p228_p9), [#allocation2], %s492_s13  ;;  %p270_p11 = scmp.lt.s32.totalorder (!%p228_p9), %s632_s18, 1 }
  0x20   : > { %v646_v2 = vmov 0.0   ;;  %vm647_vm0 = vmmov 0   ;;  %v302_v3 = vld [vmem:[%s781_s3] sm:$0xff]  ;;  %v648_v4 = vmov 0   ;;  %v279_v5 = vld [vmem:[%s236_s25 + $0x8] sm:$0xff]  ;;  %s796_s17 = smov (!%p266_p10, %s628_s17), 1 }
  0x21   : > { %511 = vmatprep.subr.mxu0 %v646_v2  ;;  %527 = vmatprep.mubr.msk.f32.mxu0 %vm647_vm0, %v646_v2  ;;  %v278_v6 = vld [vmem:[%s236_s25] sm:$0xff]  ;;  %s493_s15 = sshll.u32 %s796_s17, 2  ;;  %vm308_vm1 = vcmask 523264   ;;  %s798_s18 = smov (!%p270_p11, %s632_s18), 1 }
  0x22   : > { %589 = vset.pattern.permute.xlu0 %v648_v4  ;;  %512 = vmatpush3.msra.mxu0 %v279_v5  ;;  %s269_s29 = scalar_lea.vmem %s779_s1, %s493_s15  ;;  %v301_v16 = vld [vmem:[%s780_s2] sm:$0xff]  ;;  %s494_s6 = sshll.u32 %s798_s18, 1 }
  0x23   : > { %305 = vperm.xlu0 %589, %v302_v3   ;;  %513 = vmatprep.subr.mxu0 %v646_v2  ;;  %v498_v7 = vld [vmem:[%s269_s29 + $0x2] ss:$0 sm:$0xff]  ;;  %v497_v8 = vld [vmem:[%s269_s29 + $0x1] ss:$0 sm:$0xff]  ;;  %v496_v12 = vld [vmem:[%s269_s29] ss:$0 sm:$0xff]  ;;  %s275_s7 = sadd.s32 %s494_s6, %s796_s17 }
  0x24   : > { %514 = vmatpush3.msra.mxu0 %v278_v6  ;;  %v300_v9 = vmul.f32 %v498_v7, %v279_v5  ;;  %v299_v10 = vmul.f32 %v498_v7, %v278_v6  ;;  %v293_v11 = vmul.f32 %v497_v8, %v279_v5  ;;  %v292_v13 = vmul.f32 %v497_v8, %v278_v6  ;;  %s495_s8 = sshll.u32 %s275_s7, 3 }
  0x25   : > { %515 = vmatprep.subr.mxu0 %v646_v2  ;;  %v286_v14 = vmul.f32 %v496_v12, %v279_v5  ;;  %v285_v15 = vmul.f32 %v496_v12, %v278_v6  ;;  %s277_s11 = scalar_lea.vmem %s782_s4, %s495_s8 }
  0x26   : > { %516 = vmatpush3.msra.mxu0 %v300_v9 }
  0x27   : > { %517 = vmatprep.subr.mxu0 %v646_v2 }
  0x28   : > { %518 = vmatpush3.msra.mxu0 %v299_v10 }
  0x29   : > { %519 = vmatprep.subr.mxu0 %v646_v2 }
  0x2a   : > { %520 = vmatpush3.msra.mxu0 %v293_v11 }
  0x2b   : > { %521 = vmatprep.subr.mxu0 %v646_v2 }
  0x2c   : > { %522 = vmatpush3.msra.mxu0 %v292_v13 }
  0x2d   : > { %523 = vmatprep.subr.mxu0 %v646_v2 }
  0x2e   : > { %524 = vmatpush3.msra.mxu0 %v286_v14 }
  0x2f   : > { %525 = vmatprep.subr.mxu0 %v646_v2 }
  0x30   : > { %526 = vmatpush3.msra.mxu0 %v285_v15 }
  0x31   : > { %528 = vmatmul.mubr.msk.f32.vlgmr.msra.gmra.mxu0 %vm308_vm1, %v301_v16 }
  0x9e   : > { %v306_v17 = vpop.permute.xlu0 %305 }
  0xf1   : > { %v378_v18 = vpop.f32.mrf.mxu0 }
  0xf2   : > { %v379_v19 = vadd.f32 %v378_v18, %v306_v17 }
  0xf3   : > { %v529_v20 = vpop.f32.mrf.mxu0 }
  0xf4   : > { %v382_v21 = vmax.f32 %v379_v19, 0.0 }
  0xf6   : > { %383 = vst [vmem:[%s277_s11] sm:$0xff] %v382_v21 }
  0xf7 PF: > { %s14_s21 = sadd.s32 1, %s644_s21   ;;  %s783_s15 = smov %s624_s16 }
  0xf8   : > { %p11_p12 = scmp.ge.s32.totalorder %s14_s21, 6   ;;  %s784_s16 = smov %s725_s28 }
  0xf9   : > { %s785_s17 = smov %s636_s19  ;;  %s786_s18 = smov %s640_s20 }
  0xfa   : > { %s787_s19 = smov %s790_s22  ;;  %s788_s20 = smov %s794_s23 }
  0xfb   :  { %13 = sbr.rel (!%p11_p12) target bundleno = 4 (0x4), region = 112 }

// kernel: adaptive_graph_conv_mod.2
= control target key start
LH: loop header
LB: loop body
LE: loop exit
PB: predicated region body
PF: predicated region fallthrough
CT: control target
= control target key end

     0   :  { %s646_s12 = smov 0   ;;  %s648_s13 = smov 0   ;;  %s760_s0 = inlined_call_operand.vmem [shape: f32[2,16,256], index: 0, kind: input, shape index: {}]   ;;  %s761_s1 = inlined_call_operand.vmem [shape: f32[3,256], index: 1, kind: input, shape index: {}]   ;;  %s762_s2 = inlined_call_operand.vmem [shape: f32[16,64], index: 2, kind: input, shape index: {}]   ;;  %s763_s3 = inlined_call_operand.vmem [shape: f32[2,8,4], index: 3, kind: output, shape index: {}]  }
   0x1   :  { %s650_s14 = smov 0   ;;  %s652_s15 = smov 0  }
   0x2   :  { %s654_s16 = smov 0   ;;  %s656_s17 = smov 0  }
   0x3   :  { %s658_s18 = smov 0  }
   0x4 LB: > { %s22_s19 = sadd.s32 1, %s615_s16  ;;  %s25_s20 = sadd.s32 1, %s619_s17  ;;  %s623_s18 = sphi %s658_s18, %s13_s18   ;;  %s619_s17 = sphi %s656_s17, %s769_s17   ;;  %s615_s16 = sphi %s654_s16, %s768_s16   ;;  %s611_s15 = sphi %s652_s15, %s767_s15   ;;  %s607_s14 = sphi %s650_s14, %s766_s14   ;;  %s603_s13 = sphi %s648_s13, %s765_s13   ;;  %s599_s12 = sphi %s646_s12, %s764_s12  }
   0x5   : > { %p23_p0 = scmp.ge.s32.totalorder %s22_s19, 2  ;;  %p41_p1 = scmp.ne.s32.totalorder %s603_s13, %s599_s12 }
   0x6   : > { %p42_p2 = scmp.eq.s32.totalorder %s623_s18, 0  ;;  %s34_s24 = sadd.s32 1, %s603_s13 }
   0x7   : > { %s771_s19 = smov (%p23_p0, %s22_s19), 0  ;;  %s773_s20 = smov (!%p23_p0, %s25_s20), %s619_s17 }
   0x8   : > { %p43_p3 = por %p42_p2, %p41_p1  ;;  %p27_p4 = scmp.ge.s32.totalorder %s773_s20, 2 }
   0x9   : > { %s30_s21 = ssub.s32 %s615_s16, %s771_s19  ;;  %p467_p6 = scmp.ge.s32.totalorder %s623_s18, 4 }
   0xa   : > { %s775_s20 = smov (%p27_p4, %s773_s20), 0 }
   0xb   : > { %s29_s22 = ssub.s32 %s619_s17, %s775_s20  ;;  %143 = sbr.rel (%p467_p6) target bundleno = 23 (0x17), region = 20 }
   0xc   : > { %s31_s23 = sor.u32 %s30_s21, %s29_s22 }
   0xd   : > { %p32_p5 = scmp.eq.s32.totalorder %s31_s23, 0 }
   0xf   : > { %s697_s25 = scalar_select %p32_p5, %s603_s13, %s34_s24  }
  0x10   : > { %146 = sbr.rel (!%p43_p3) target bundleno = 23 (0x17), region = 24  ;;  %s148_s26 = sand.u32 (%p43_p3), 1, %s603_s13  }
  0x11   : > { %s469_s27 = sshll.u32 (%p43_p3), %s619_s17, 2  ;;  %s468_s28 = sshll.u32 (%p43_p3), %s148_s26, 4 }
  0x12   : > { %s152_s29 = sadd.s32 (%p43_p3), %s615_s16, %s469_s27  ;;  %s150_s7 = scalar_lea.vmem (%p43_p3), [#allocation2], %s468_s28 }
  0x13   : > { %s470_s30 = sshll.u32 (%p43_p3), %s152_s29, 3 }
  0x14   : > { %s154_s6 = scalar_lea.vmem (%p43_p3), %s760_s0, %s470_s30 }
  0x15   : > { %v185_v0 = vld [vmem:[%s154_s6] sm:$0xff]  ;;  %v187_v1 = vld [vmem:[%s154_s6 + $0x10] sm:$0xff] }
  0x16   : > { %186 = vst [vmem:[%s150_s7] sm:$0xff] %v185_v0  ;;  %188 = vst [vmem:[%s150_s7 + $0x8] sm:$0xff] %v187_v1 }
  0x17 PF: > { %p471_p7 = scmp.ge.s32.totalorder %s623_s18, 1  ;;  %p200_p8 = scmp.lt.s32.totalorder %s623_s18, 5 }
  0x19   : > { %p201_p9 = pnand %p471_p7, %p200_p8 }
  0x1a   : > { %s207_s8 = sand.u32 (!%p201_p9), 1, %s599_s12   ;;  %p233_p10 = scmp.lt.s32.totalorder (!%p201_p9), %s607_s14, 1 }
  0x1b   : > { %204 = sbr.rel (%p201_p9) target bundleno = 423 (0x1a7), region = 66  ;;  %s472_s9 = sshll.u32 (!%p201_p9), %s207_s8, 4 }
  0x1c   : > { %p237_p11 = scmp.lt.s32.totalorder (!%p201_p9), %s611_s15, 1  ;;  %s209_s29 = scalar_lea.vmem (!%p201_p9), [#allocation2], %s472_s9 }
  0x1d   : > { %p475_p12 = scmp.ne.s32.totalorder (!%p201_p9), %s607_s14, 0 }
  0x20   : > { %s234_s10 = scalar_select %p233_p10, %s607_s14, 1 }
  0x21   : > { %s777_s15 = smov (!%p237_p11, %s611_s15), 1  ;;  %244 = sbr.rel (%p475_p12) target bundleno = 40 (0x28), region = 74 }
  0x22   : > { %s473_s11 = sshll.u32 %s234_s10, 2  ;;  %s474_s24 = sshll.u32 %s777_s15, 3 }
  0x23   : > { %s236_s23 = scalar_lea.vmem %s761_s1, %s473_s11  ;;  %s719_s28 = scalar_lea.vmem %s763_s3, %s474_s24 }
  0x26   : > { %vm245_vm0 = vcmask 31744   ;;  %v625_v2 = vmov 0.0  }
  0x27   : > { %246 = vst.msk [vmem:[%s719_s28] sm:$0xff] %vm245_vm0, %v625_v2 }
  0x28 PF: > { %v248_v3 = vld [vmem:[%s209_s29 + $0x8] sm:$0xff]  ;;  %v247_v4 = vld [vmem:[%s209_s29] sm:$0xff]  ;;  %vm272_vm1 = vcmask 523264   ;;  %vm358_vm2 = vcmask 7168   ;;  %vm365_vm3 = vcmask 15368   ;;  %vm371_vm4 = vcmask 23568  }
  0x29   : > { %v478_v5 = vld [vmem:[%s236_s23 + $0x2] ss:$0 sm:$0xff]  ;;  %493 = vmatprep.subr.mxu0 %v248_v3  ;;  %v477_v8 = vld [vmem:[%s236_s23 + $0x1] ss:$0 sm:$0xff]  ;;  %v476_v11 = vld [vmem:[%s236_s23] ss:$0 sm:$0xff] }
  0x2a   : > { %v269_v6 = vmul.f32 %v478_v5, %v248_v3  ;;  %v270_v7 = vld [vmem:[%s762_s2] sm:$0xff]  ;;  %494 = vmatpush3.msra.mxu0 %v248_v3  ;;  %v268_v9 = vmul.f32 %v478_v5, %v247_v4  ;;  %v262_v10 = vmul.f32 %v477_v8, %v248_v3  ;;  %v261_v12 = vmul.f32 %v477_v8, %v247_v4  ;;  %v271_v15 = vld [vmem:[%s762_s2 + $0x8] sm:$0xff] }
  0x2b   : > { %495 = vmatprep.subr.mxu0 %v247_v4  ;;  %509 = vmatprep.mubr.msk.f32.mxu0 %vm272_vm1, %v270_v7  ;;  %v255_v13 = vmul.f32 %v476_v11, %v248_v3  ;;  %v254_v14 = vmul.f32 %v476_v11, %v247_v4  ;;  %vm378_vm5 = vcmask 31768  }
  0x2c   : > { %496 = vmatpush3.msra.mxu0 %v247_v4 }
  0x2d   : > { %497 = vmatprep.subr.mxu0 %v269_v6 }
  0x2e   : > { %498 = vmatpush3.msra.mxu0 %v269_v6  ;;  %v354_v20 = vld [vmem:[%s719_s28] sm:$0xff] }
  0x2f   : > { %499 = vmatprep.subr.mxu0 %v268_v9 }
  0x30   : > { %500 = vmatpush3.msra.mxu0 %v268_v9 }
  0x31   : > { %501 = vmatprep.subr.mxu0 %v262_v10 }
  0x32   : > { %502 = vmatpush3.msra.mxu0 %v262_v10 }
  0x33   : > { %503 = vmatprep.subr.mxu0 %v261_v12 }
  0x34   : > { %504 = vmatpush3.msra.mxu0 %v261_v12 }
  0x35   : > { %505 = vmatprep.subr.mxu0 %v255_v13 }
  0x36   : > { %506 = vmatpush3.msra.mxu0 %v255_v13 }
  0x37   : > { %507 = vmatprep.subr.mxu0 %v254_v14 }
  0x38   : > { %508 = vmatpush3.msra.mxu0 %v254_v14 }
  0x39   : > { %510 = vmatmul.mubr.msk.f32.vlgmr.msra.gmra.mxu0 %vm272_vm1, %v271_v15 }
  0xf9   : > { %v511_v16 = vpop.f32.mrf.mxu0 }
  0xfa   : > { %368 = vadd.xlane.f32.xlu1 %v511_v16  ;;  %v374_v18 = vmul.f32 %v511_v16, %v511_v16 }
  0xfb   : > { %v345_v17 = vpop.f32.mrf.mxu0 }
  0xfc   : > { %355 = vadd.xlane.f32.xlu0 %v345_v17  ;;  %v361_v19 = vmul.f32 %v345_v17, %v345_v17 }
  0xfe   : > { %375 = vadd.xlane.f32.xlu1 %v374_v18 }
 0x100   : > { %362 = vadd.xlane.f32.xlu0 %v361_v19 }
 0x183   : > { %v369_v26 = vpop.xlane.xlu1 %368 }
 0x185   : > { %v356_v21 = vpop.xlane.xlu0 %355 }
 0x186   : > { %v357_v22 = vadd.f32 %v356_v21, %v354_v20 }
 0x187   : > { %v376_v29 = vpop.xlane.xlu1 %375 }
 0x188   : > { %359 = vst.msk [vmem:[%s719_s28] sm:$0xff] %vm358_vm2, %v357_v22 }
 0x189   : > { %v363_v24 = vpop.xlane.xlu0 %362 }
 0x18f   : > { %v360_v23 = vld [vmem:[%s719_s28] sm:$0xff] }
 0x190   : > { %v364_v25 = vadd.f32 %v363_v24, %v360_v23 }
 0x192   : > { %366 = vst.msk [vmem:[%s719_s28] sm:$0xff] %vm365_vm3, %v364_v25 }
 0x199   : > { %v367_v27 = vld [vmem:[%s719_s28] sm:$0xff] }
 0x19a   : > { %v370_v28 = vadd.f32 %v369_v26, %v367_v27 }
 0x19c   : > { %372 = vst.msk [vmem:[%s719_s28] sm:$0xff] %vm371_vm4, %v370_v28 }
 0x1a3   : > { %v373_v30 = vld [vmem:[%s719_s28] sm:$0xff] }
 0x1a4   : > { %v377_v31 = vadd.f32 %v376_v29, %v373_v30 }
 0x1a6   : > { %379 = vst.msk [vmem:[%s719_s28] sm:$0xff] %vm378_vm5, %v377_v31 }
 0x1a7 PF: > { %s13_s18 = sadd.s32 1, %s623_s18   ;;  %s764_s12 = smov %s603_s13 }
 0x1a8   : > { %p10_p13 = scmp.ge.s32.totalorder %s13_s18, 6   ;;  %s765_s13 = smov %s697_s25 }
 0x1a9   : > { %s766_s14 = smov %s615_s16  ;;  %s767_s15 = smov %s619_s17 }
 0x1aa   : > { %s768_s16 = smov %s771_s19  ;;  %s769_s17 = smov %s775_s20 }
 0x1ab   :  { %12 = sbr.rel (!%p10_p13) target bundleno = 4 (0x4), region = 112 }

</bundles_post_ra>
